<compile_context>
chip_gen: v7x
topology: tpu7x:2x2x1
jax: 0.10.0
libtpu: 0.0.40
codegen_flags: <defaults>
</compile_context>

<pallas_src>
import functools

import jax
import jax.numpy as jnp
from jax.experimental import pallas as pl
from jax.experimental.pallas import tpu as pltpu

LANE = 128      # vreg lane width
SUB = 8         # sublanes of an f32 vreg
NCORES = 2      # leading "parallel" grid axis (both TCs on v7x; harmless on 1-TC chips)
TR_MAX = 4096   # rows per DMA block: 4096 * 128 * 4B = 2 MiB f32
CHUNK = 512     # rows per in-kernel compute chunk (bounds VMEM temporaries)


def _dice_bce_kernel(x_ref, t_ref, inter_ref, xt_ref, bce_ref, *,
                     tr, ch, m_rows, steps_per_core, needs_mask):
    c = pl.program_id(0)   # core / half (parallel)
    i = pl.program_id(1)   # sequential step within this core's range (arbitrary)

    @pl.when(i == 0)
    def _init():
        inter_ref[...] = jnp.zeros_like(inter_ref)
        xt_ref[...] = jnp.zeros_like(xt_ref)
        bce_ref[...] = jnp.zeros_like(bce_ref)

    n_chunks = tr // ch
    row0 = (c * steps_per_core + i) * tr     # first global row of this tile

    def process(mask_rows):
        @pl.loop(0, n_chunks)
        def _chunk(j):
            start = pl.multiple_of(j * ch, ch)
            x = x_ref[pl.ds(start, ch), :].astype(jnp.float32)
            t = t_ref[pl.ds(start, ch), :].astype(jnp.float32)
            if mask_rows:
                rows = row0 + start + jax.lax.broadcasted_iota(
                    jnp.int32, (ch, LANE), 0)
                valid = rows < m_rows
                x = jnp.where(valid, x, 0.0)
                t = jnp.where(valid, t, 0.0)

            # PyTorch binary_cross_entropy clamps each log term at -100.
            # Clamps are applied BEFORE the multiply by t so masked/padded
            # zeros contribute exactly 0.
            log_p = jnp.maximum(jnp.log(x), -100.0)
            log_1mp = jnp.maximum(jnp.log1p(-x), -100.0)
            # Sign and 1/N are deferred to the wrapper.
            bce_pos = log_1mp + t * (log_p - log_1mp)

            def vsum(v):
                # (ch, 128) -> (8, 128) partial sum: pure vreg-wise VPU adds;
                # the single cross-lane reduce happens in the wrapper.
                return v.reshape(ch // SUB, SUB, LANE).sum(axis=0)

            inter_ref[0] = inter_ref[0] + vsum(x * t)
            xt_ref[0] = xt_ref[0] + vsum(x + t)
            bce_ref[0] = bce_ref[0] + vsum(bce_pos)

    if needs_mask:
        @pl.when(row0 + tr <= m_rows)          # full tile: zero mask overhead
        def _full():
            process(False)

        @pl.when(jnp.logical_and(row0 < m_rows, row0 + tr > m_rows))
        def _partial():                        # at most one tile per core
            process(True)
        # row0 >= m_rows: tile is entirely padding -> skip (contributes 0)
    else:
        process(False)


def dice_bce_loss(inputs, targets, smooth=1.0):
    """JAX/Pallas equivalent of DiceBCELoss.forward(inputs, targets, smooth).

    `inputs` are probabilities in (0, 1), matching the PyTorch module.  They
    are streamed in their native dtype (bf16 halves HBM traffic); the f32
    upcast happens inside the kernel.
    """
    n = int(inputs.size)
    x = inputs.reshape(-1)
    t = targets.reshape(-1)

    # Pad only if the element count is not a multiple of one f32 vreg (8*128);
    # common image shapes (and the demo) take the no-copy path.
    vreg = SUB * LANE
    padded = pl.cdiv(n, vreg) * vreg
    pad = padded - n
    if pad:
        x = jnp.pad(x, (0, pad))
        t = jnp.pad(t, (0, pad))

    m = padded // LANE                 # rows; multiple of 8 by construction
    x2 = x.reshape(m, LANE)            # row-major reshape: no data movement
    t2 = t.reshape(m, LANE)

    # ---- tile-size selection -------------------------------------------------
    # Prefer the largest tr <= TR_MAX (multiple of CHUNK when possible) such
    # that m == NCORES * steps * tr exactly: no in-kernel row mask and no idle
    # tiles.  Otherwise fall back to tr = cap and mask only the last tile.
    cap = min(TR_MAX, m)
    step = CHUNK if cap >= CHUNK else SUB
    cap = (cap // step) * step
    tr = cap
    exact = (m % (tr * NCORES) == 0)
    if not exact:
        cand = cap - step
        while cand >= max(step, cap // 4):
            if m % (cand * NCORES) == 0:
                tr = cand
                exact = True
                break
            cand -= step
    needs_mask = not exact
    ch = min(CHUNK, tr)                # divides tr by construction

    steps_total = pl.cdiv(m, tr)
    spc = pl.cdiv(steps_total, NCORES)           # steps per core
    last_blk = steps_total - 1

    if needs_mask:
        def in_map(c, i):
            # Clamp so tiles past the end never issue an OOB DMA; the kernel
            # skips them via pl.when.
            return (jnp.minimum(c * spc + i, last_blk), 0)
    else:
        def in_map(c, i):
            return (c * spc + i, 0)

    kernel = functools.partial(
        _dice_bce_kernel, tr=tr, ch=ch, m_rows=m,
        steps_per_core=spc, needs_mask=needs_mask)

    part_shape = jax.ShapeDtypeStruct((NCORES, SUB, LANE), jnp.float32)
    part_spec = pl.BlockSpec((1, SUB, LANE), lambda c, i: (c, 0, 0))

    # Explicit VMEM budget: 2 inputs x 2 pipeline buffers + chunk-sized f32
    # temporaries + slack.  Stays inside every generation's physical VMEM.
    block_bytes = tr * LANE * x2.dtype.itemsize
    vmem_limit = int(min(
        48 * 1024 * 1024,
        max(16 * 1024 * 1024,
            6 * block_bytes + 24 * ch * LANE * 4 + (4 << 20))))

    cost = pl.CostEstimate(
        flops=10 * n, transcendentals=2 * n,
        bytes_accessed=n * (x2.dtype.itemsize + t2.dtype.itemsize)
        + 3 * NCORES * SUB * LANE * 4)

    inter_p, xt_p, bce_p = pl.pallas_call(
        kernel,
        out_shape=(part_shape, part_shape, part_shape),
        grid_spec=pltpu.PrefetchScalarGridSpec(
            num_scalar_prefetch=0,
            grid=(NCORES, spc),
            in_specs=[
                pl.BlockSpec((tr, LANE), in_map),
                pl.BlockSpec((tr, LANE), in_map),
            ],
            out_specs=[part_spec, part_spec, part_spec],
        ),
        compiler_params=pltpu.CompilerParams(
            dimension_semantics=("parallel", "arbitrary"),
            vmem_limit_bytes=vmem_limit),
        cost_estimate=cost,
    )(x2, t2)

    # Tiny final combine (3 x 2*8*128 partials) in the wrapper.
    intersection = jnp.sum(inter_p)
    denom = jnp.sum(xt_p)
    bce_mean = -jnp.sum(bce_p) / float(n)        # deferred sign & 1/N
    dice_loss = 1.0 - (2.0 * intersection + float(smooth)) / (denom + float(smooth))
    return bce_mean + dice_loss


def _reference_dice_bce(inputs, targets, smooth=1.0):
    b = inputs.shape[0]
    x = inputs.reshape(b, -1).astype(jnp.float32)
    t = targets.reshape(b, -1).astype(jnp.float32)
    intersection = jnp.sum(x * t)
    dice_loss = 1.0 - (2.0 * intersection + smooth) / (
        jnp.sum(x) + jnp.sum(t) + smooth)
    log_p = jnp.maximum(jnp.log(x), -100.0)
    log_1mp = jnp.maximum(jnp.log1p(-x), -100.0)
    bce = jnp.mean(-(t * log_p + (1.0 - t) * log_1mp))
    return bce + dice_loss


if __name__ == "__main__":
    key = jax.random.PRNGKey(0)
    k1, k2 = jax.random.split(key)

    # NCHW inputs, same convention as the PyTorch module.
    B, C, H, W = 2, 4, 16, 16
    logits = jax.random.normal(k1, (B, C, H, W), dtype=jnp.float32)
    inputs = jax.nn.sigmoid(logits)  # probabilities in (0, 1)
    targets = (jax.random.uniform(k2, (B, C, H, W)) > 0.5).astype(jnp.float32)

    loss = jax.block_until_ready(dice_bce_loss(inputs, targets, smooth=1.0))
    ref = jax.block_until_ready(_reference_dice_bce(inputs, targets, smooth=1.0))

    assert jnp.allclose(loss, ref, rtol=1e-5, atol=1e-5), (loss, ref)
    print("KERNEL_OK")
</pallas_src>

<mosaic_0001>
module attributes {stable_mosaic.version = 11 : i64} {
  func.func @_dice_bce_kernel(%arg0: i32, %arg1: i32, %arg2: memref<8x128xf32, #tpu.memory_space<vmem>>, %arg3: memref<8x128xf32, #tpu.memory_space<vmem>>, %arg4: memref<1x8x128xf32, #tpu.memory_space<vmem>>, %arg5: memref<1x8x128xf32, #tpu.memory_space<vmem>>, %arg6: memref<1x8x128xf32, #tpu.memory_space<vmem>>) attributes {dimension_semantics = [#tpu.dimension_semantics<parallel>, #tpu.dimension_semantics<arbitrary>], iteration_bounds = array<i64: 2, 1>, scalar_prefetch = 0 : i64, scratch_operands = 0 : i64, tpu.core_type = #tpu.core_type<tc>, window_params = [{transform_indices = @transform_0, window_bounds = array<i64: 8, 128>}, {transform_indices = @transform_1, window_bounds = array<i64: 8, 128>}, {transform_indices = @transform_2, window_bounds = array<i64: 1, 8, 128>}, {transform_indices = @transform_3, window_bounds = array<i64: 1, 8, 128>}, {transform_indices = @transform_4, window_bounds = array<i64: 1, 8, 128>}]} {
    %c0_i32 = arith.constant 0 : i32
    %0 = arith.cmpi eq, %arg1, %c0_i32 : i32
    %1 = arith.extui %0 : i1 to i32
    %c0_i32_0 = arith.constant 0 : i32
    %2 = arith.cmpi ne, %1, %c0_i32_0 : i32
    scf.if %2 {
      %cst_28 = arith.constant 0.000000e+00 : f32
      %48 = vector.broadcast %cst_28 : f32 to vector<1x8x128xf32>
      %c0_29 = arith.constant 0 : index
      %c0_30 = arith.constant 0 : index
      %c0_31 = arith.constant 0 : index
      %49 = vector.load %arg4[%c0_29, %c0_30, %c0_31] : memref<1x8x128xf32, #tpu.memory_space<vmem>>, vector<1x8x128xf32>
      tpu.vector_store %arg4[%c0_29, %c0_30, %c0_31], %48 {strides = array<i32>} : memref<1x8x128xf32, #tpu.memory_space<vmem>>, vector<1x8x128xf32>,
      %cst_32 = arith.constant 0.000000e+00 : f32
      %50 = vector.broadcast %cst_32 : f32 to vector<1x8x128xf32>
      %c0_33 = arith.constant 0 : index
      %c0_34 = arith.constant 0 : index
      %c0_35 = arith.constant 0 : index
      %51 = vector.load %arg5[%c0_33, %c0_34, %c0_35] : memref<1x8x128xf32, #tpu.memory_space<vmem>>, vector<1x8x128xf32>
      tpu.vector_store %arg5[%c0_33, %c0_34, %c0_35], %50 {strides = array<i32>} : memref<1x8x128xf32, #tpu.memory_space<vmem>>, vector<1x8x128xf32>,
      %cst_36 = arith.constant 0.000000e+00 : f32
      %52 = vector.broadcast %cst_36 : f32 to vector<1x8x128xf32>
      %c0_37 = arith.constant 0 : index
      %c0_38 = arith.constant 0 : index
      %c0_39 = arith.constant 0 : index
      %53 = vector.load %arg6[%c0_37, %c0_38, %c0_39] : memref<1x8x128xf32, #tpu.memory_space<vmem>>, vector<1x8x128xf32>
      tpu.vector_store %arg6[%c0_37, %c0_38, %c0_39], %52 {strides = array<i32>} : memref<1x8x128xf32, #tpu.memory_space<vmem>>, vector<1x8x128xf32>,
    } else {
    }
    %c0_i32_1 = arith.constant 0 : i32
    %c1_i32 = arith.constant 1 : i32
    %3 = arith.muli %c0_i32_1, %c1_i32 : i32
    %c0_i32_2 = arith.constant 0 : i32
    %4 = arith.addi %c0_i32_2, %3 : i32
    %c8_i32 = arith.constant 8 : i32
    %5 = arith.muli %4, %c8_i32 : i32
    %6 = tpu.assume_multiple %5, 8 : i32
    %7 = arith.index_cast %6 : i32 to index
    %c0 = arith.constant 0 : index
    %8 = vector.load %arg2[%7, %c0] : memref<8x128xf32, #tpu.memory_space<vmem>>, vector<8x128xf32>
    %9 = arith.index_cast %6 : i32 to index
    %c0_3 = arith.constant 0 : index
    %10 = vector.load %arg3[%9, %c0_3] : memref<8x128xf32, #tpu.memory_space<vmem>>, vector<8x128xf32>
    %11 = math.log %8 : vector<8x128xf32>
    %cst = arith.constant -1.000000e+02 : f32
    %12 = vector.broadcast %cst : f32 to vector<8x128xf32>
    %13 = arith.maximumf %11, %12 : vector<8x128xf32>
    %cst_4 = arith.constant 0.000000e+00 : f32
    %14 = vector.broadcast %cst_4 : f32 to vector<8x128xf32>
    %15 = arith.subf %14, %8 : vector<8x128xf32>
    %16 = math.log1p %15 : vector<8x128xf32>
    %cst_5 = arith.constant -1.000000e+02 : f32
    %17 = vector.broadcast %cst_5 : f32 to vector<8x128xf32>
    %18 = arith.maximumf %16, %17 : vector<8x128xf32>
    %19 = arith.subf %13, %18 : vector<8x128xf32>
    %20 = arith.mulf %10, %19 : vector<8x128xf32>
    %21 = arith.addf %18, %20 : vector<8x128xf32>
    %c0_6 = arith.constant 0 : index
    %c0_7 = arith.constant 0 : index
    %c0_8 = arith.constant 0 : index
    %22 = vector.load %arg4[%c0_6, %c0_7, %c0_8] : memref<1x8x128xf32, #tpu.memory_space<vmem>>, vector<1x8x128xf32>
    %23 = vector.shape_cast %22 : vector<1x8x128xf32> to vector<8x128xf32>
    %24 = arith.mulf %8, %10 : vector<8x128xf32>
    %25 = vector.shape_cast %24 : vector<8x128xf32> to vector<1x8x128xf32>
    %cst_9 = arith.constant dense<0.000000e+00> : vector<8x128xf32>
    %26 = vector.multi_reduction <add>, %25, %cst_9 [0] : vector<1x8x128xf32> to vector<8x128xf32>
    %27 = arith.addf %23, %26 : vector<8x128xf32>
    %c0_10 = arith.constant 0 : index
    %c0_11 = arith.constant 0 : index
    %c0_12 = arith.constant 0 : index
    %28 = vector.load %arg4[%c0_10, %c0_11, %c0_12] : memref<1x8x128xf32, #tpu.memory_space<vmem>>, vector<1x8x128xf32>
    %29 = vector.shape_cast %28 : vector<1x8x128xf32> to vector<8x128xf32>
    %30 = vector.shape_cast %27 : vector<8x128xf32> to vector<1x8x128xf32>
    tpu.vector_store %arg4[%c0_10, %c0_11, %c0_12], %30 {strides = array<i32>} : memref<1x8x128xf32, #tpu.memory_space<vmem>>, vector<1x8x128xf32>,
    %c0_13 = arith.constant 0 : index
    %c0_14 = arith.constant 0 : index
    %c0_15 = arith.constant 0 : index
    %31 = vector.load %arg5[%c0_13, %c0_14, %c0_15] : memref<1x8x128xf32, #tpu.memory_space<vmem>>, vector<1x8x128xf32>
    %32 = vector.shape_cast %31 : vector<1x8x128xf32> to vector<8x128xf32>
    %33 = arith.addf %8, %10 : vector<8x128xf32>
    %34 = vector.shape_cast %33 : vector<8x128xf32> to vector<1x8x128xf32>
    %cst_16 = arith.constant dense<0.000000e+00> : vector<8x128xf32>
    %35 = vector.multi_reduction <add>, %34, %cst_16 [0] : vector<1x8x128xf32> to vector<8x128xf32>
    %36 = arith.addf %32, %35 : vector<8x128xf32>
    %c0_17 = arith.constant 0 : index
    %c0_18 = arith.constant 0 : index
    %c0_19 = arith.constant 0 : index
    %37 = vector.load %arg5[%c0_17, %c0_18, %c0_19] : memref<1x8x128xf32, #tpu.memory_space<vmem>>, vector<1x8x128xf32>
    %38 = vector.shape_cast %37 : vector<1x8x128xf32> to vector<8x128xf32>
    %39 = vector.shape_cast %36 : vector<8x128xf32> to vector<1x8x128xf32>
    tpu.vector_store %arg5[%c0_17, %c0_18, %c0_19], %39 {strides = array<i32>} : memref<1x8x128xf32, #tpu.memory_space<vmem>>, vector<1x8x128xf32>,
    %c0_20 = arith.constant 0 : index
    %c0_21 = arith.constant 0 : index
    %c0_22 = arith.constant 0 : index
    %40 = vector.load %arg6[%c0_20, %c0_21, %c0_22] : memref<1x8x128xf32, #tpu.memory_space<vmem>>, vector<1x8x128xf32>
    %41 = vector.shape_cast %40 : vector<1x8x128xf32> to vector<8x128xf32>
    %42 = vector.shape_cast %21 : vector<8x128xf32> to vector<1x8x128xf32>
    %cst_23 = arith.constant dense<0.000000e+00> : vector<8x128xf32>
    %43 = vector.multi_reduction <add>, %42, %cst_23 [0] : vector<1x8x128xf32> to vector<8x128xf32>
    %44 = arith.addf %41, %43 : vector<8x128xf32>
    %c0_24 = arith.constant 0 : index
    %c0_25 = arith.constant 0 : index
    %c0_26 = arith.constant 0 : index
    %45 = vector.load %arg6[%c0_24, %c0_25, %c0_26] : memref<1x8x128xf32, #tpu.memory_space<vmem>>, vector<1x8x128xf32>
    %46 = vector.shape_cast %45 : vector<1x8x128xf32> to vector<8x128xf32>
    %47 = vector.shape_cast %44 : vector<8x128xf32> to vector<1x8x128xf32>
    tpu.vector_store %arg6[%c0_24, %c0_25, %c0_26], %47 {strides = array<i32>} : memref<1x8x128xf32, #tpu.memory_space<vmem>>, vector<1x8x128xf32>,
    %c1_i32_27 = arith.constant 1 : i32
    return
  }
  func.func @transform_0(%arg0: i32, %arg1: i32) -> (i32, i32) {
    %c1_i32 = arith.constant 1 : i32
    %0 = arith.muli %arg0, %c1_i32 : i32
    %1 = arith.addi %0, %arg1 : i32
    %c0_i32 = arith.constant 0 : i32
    %c0_i32_0 = arith.constant 0 : i32
    return %1, %c0_i32 : i32, i32
  }
  func.func @transform_1(%arg0: i32, %arg1: i32) -> (i32, i32) {
    %c1_i32 = arith.constant 1 : i32
    %0 = arith.muli %arg0, %c1_i32 : i32
    %1 = arith.addi %0, %arg1 : i32
    %c0_i32 = arith.constant 0 : i32
    %c0_i32_0 = arith.constant 0 : i32
    return %1, %c0_i32 : i32, i32
  }
  func.func @transform_2(%arg0: i32, %arg1: i32) -> (i32, i32, i32) {
    %c0_i32 = arith.constant 0 : i32
    %c0_i32_0 = arith.constant 0 : i32
    %c0_i32_1 = arith.constant 0 : i32
    return %arg0, %c0_i32, %c0_i32_0 : i32, i32, i32
  }
  func.func @transform_3(%arg0: i32, %arg1: i32) -> (i32, i32, i32) {
    %c0_i32 = arith.constant 0 : i32
    %c0_i32_0 = arith.constant 0 : i32
    %c0_i32_1 = arith.constant 0 : i32
    return %arg0, %c0_i32, %c0_i32_0 : i32, i32, i32
  }
  func.func @transform_4(%arg0: i32, %arg1: i32) -> (i32, i32, i32) {
    %c0_i32 = arith.constant 0 : i32
    %c0_i32_0 = arith.constant 0 : i32
    %c0_i32_1 = arith.constant 0 : i32
    return %arg0, %c0_i32, %c0_i32_0 : i32, i32, i32
  }
}

</mosaic_0001>

<bundles_post_ra>
// kernel: tpu_custom_call.1
= control target key start
LH: loop header
LB: loop body
LE: loop exit
PB: predicated region body
PF: predicated region fallthrough
CT: control target
= control target key end

     0   :  { %10 = vsyncpa [#allocation3], 0  ;;  %s1189_s0 = inlined_call_operand.hbm [shape: f32[16,128], index: 0, kind: input, shape index: {}]   ;;  %s1190_s1 = inlined_call_operand.hbm [shape: f32[16,128], index: 1, kind: input, shape index: {}]   ;;  %s1191_s2 = inlined_call_operand.hbm [shape: f32[2,8,128], index: 2, kind: output, shape index: {0}]   ;;  %s1192_s3 = inlined_call_operand.hbm [shape: f32[2,8,128], index: 3, kind: output, shape index: {1}]   ;;  %s1193_s4 = inlined_call_operand.hbm [shape: f32[2,8,128], index: 4, kind: output, shape index: {2}]  }
   0x1   :  { %12 = vsyncpa [#allocation3 + $0x1], 0 }
   0x2   :  { %13 = vsyncpa [#allocation6], 0 }
   0x3   :  { %15 = vsyncpa [#allocation6 + $0x1], 0 }
   0x4   :  { %16 = vsyncpa [#allocation4], 0 }
   0x5   :  { %18 = vsyncpa [#allocation4 + $0x1], 0 }
   0x6   :  { %19 = vsyncpa [#allocation9], 0 }
   0x7   :  { %21 = vsyncpa [#allocation9 + $0x1], 0  ;;  %s884_s15 = smov 0   ;;  %s886_s16 = smov 0  }
   0x8   :  { %s888_s17 = smov 0   ;;  %s890_s18 = smov 0  }
   0x9   :  { %s892_s19 = smov 0   ;;  %s894_s20 = smov 0  }
   0xa LB: > { %s915_s21 = sadd.s32 4294967295, %s852_s20   ;;  %s1194_s22 = sadd.s32 4294967294, %s852_s20   ;;  %s852_s20 = sphi %s894_s20, %s27_s20   ;;  %s848_s19 = sphi %s892_s19, %s1215_s19   ;;  %s844_s18 = sphi %s890_s18, %s1214_s18   ;;  %s840_s17 = sphi %s888_s17, %s1213_s17   ;;  %s836_s16 = sphi %s886_s16, %s1212_s16   ;;  %s832_s15 = sphi %s884_s15, %s1211_s15  }
   0xb   : > { %s39_s23 = sadd.s32 1, %s848_s19  ;;  %s48_s24 = sadd.s32 1, %s840_s17 }
   0xc   : > { %p41_p0 = scmp.ge.s32.totalorder %s39_s23, 2  ;;  %p55_p1 = scmp.ne.s32.totalorder %s840_s17, %s836_s16 }
   0xd   : > { %p56_p2 = scmp.eq.s32.totalorder %s852_s20, 0  ;;  %p61_p3 = scmp.ne.s32.totalorder %s836_s16, %s832_s15 }
   0xe   : > { %s1217_s23 = smov (%p41_p0, %s39_s23), 0  ;;  %p62_p5 = scmp.eq.s32.totalorder %s915_s21, 0 }
   0xf   : > { %p927_p4 = por %p56_p2, %p55_p1  ;;  %s45_s26 = ssub.s32 %s848_s19, %s1217_s23 }
  0x10   : > { %p113_p6 = scmp.eq.s32.totalorder %s915_s21, 1  ;;  %p46_p7 = scmp.eq.s32.totalorder %s45_s26, 0 }
  0x11   : > { %p935_p8 = por %p62_p5, %p61_p3  ;;  %p119_p10 = scmp.eq.s32.totalorder %s1194_s22, 1 }
  0x12   : > { %p939_p9 = por %p113_p6, %p55_p1  ;;  %p591_p13 = scmp.lt.s32.totalorder %s852_s20, 2 }
  0x13   : > { %s1198_s27 = scalar_select %p935_p8, 1, 0 }
  0x14   : > { %s1199_s28 = scalar_select %p939_p9, 1, 0 }
  0x15   : > { %s946_s29 = scalar_select %p46_p7, %s840_s17, %s48_s24  }
  0x16   : > { %p948_p11 = por %p119_p10, %p61_p3  ;;  %s955_s5 = sand.u32 1, %s840_s17  }
  0x17   : > { %s546_s6 = sshll.u32 %s955_s5, 3  ;;  %s547_s7 = sshll.u32 %s848_s19, 7 }
  0x18   : > { %s1200_s30 = scalar_select %p948_p11, 1, 0 }
  0x19   : > { %s964_s10 = scalar_lea.hbm %s1189_s0, %s547_s7  ;;  %s195_s11 = scalar_lea.vmem [#allocation2], %s546_s6 }
  0x1a   : > { %s203_s12 = sshll.u32 %s195_s11, 4  ;;  %p972_p0 = pnand %p591_p13, %p927_p4  ;;  %s968_s12 = int_to_ptr.vmem [resolvable:$true] %s203_s12 }
  0x1b   : > { %s192_s14 = scalar_lea.sflag [#allocation3], %s955_s5  ;;  %s646_s24 = scalar_lea.hbm %s964_s10, 128 }
  0x1c   : > { %p647_p3 = scmp.ne.s32.totalorder %s964_s10, %s646_s24  ;;  %p648_p5 = pneg %p972_p0 }
  0x1d   : > { %s651_s25 = scalar_lea.hbm %s1189_s0, 256  ;;  %p652_p4 = scmp.lt.u32.totalorder %s964_s10, %s1189_s0 }
  0x1e   : > { %p649_p6 = pnand %p648_p5, %p647_p3  ;;  %p653_p10 = scmp.lt.u32.totalorder %s651_s25, %s646_s24 }
  0x1f   : > { %p655_p12 = scmp.lt.u32.totalorder %s646_s24, %s964_s10 }
  0x20   : > { %p650_p7 = pneg %p649_p6  ;;  %p654_p13 = por %p653_p10, %p652_p4 }
  0x22   : > { %p656_p1 = por %p655_p12, %p654_p13 }
  0x24   : > { %p657_p2 = pnand %p656_p1, %p650_p7 }
  0x26   : > { %660 = shalt.err (!%p657_p2)
}
  0x27   : > { %s661_s22 = scalar_lea.vmem %s968_s12, 128  ;;  %s854_s26 = smov [#allocation2]  }
  0x28   : > { %p662_p3 = scmp.ne.s32.totalorder %s968_s12, %s661_s22  ;;  %s666_s8 = sshll.u32 %s854_s26, 4  ;;  %s667_s8 = int_to_ptr.vmem [resolvable:$false] %s666_s8 }
  0x29   : > { %s668_s9 = scalar_lea.vmem %s667_s8, 256  ;;  %p669_p9 = scmp.lt.s32.totalorder %s968_s12, %s667_s8 }
  0x2a   : > { %p664_p6 = pnand %p662_p3, %p648_p5  ;;  %p670_p4 = scmp.lt.s32.totalorder %s668_s9, %s661_s22 }
  0x2c   : > { %p665_p11 = pneg %p664_p6  ;;  %p671_p10 = por %p670_p4, %p669_p9 }
  0x2e   : > { %p672_p12 = pnand %p671_p10, %p665_p11 }
  0x30   : > { %675 = shalt.err (!%p672_p12)
}
  0x31   : > { %577 = dma.hbm_to_vmem [thread:$0]  (!%p972_p0), %s964_s10, 128, %s968_s12, %s192_s14  }
  0x32   : > { %p1202_p1 = scmp.lt.s32.totalorder %s852_s20, 3  ;;  %p1203_p2 = scmp.ge.s32.totalorder %s852_s20, 1 }
  0x33   : > { %s1017_s11 = scalar_lea.hbm %s1190_s1, %s547_s7  ;;  %s214_s26 = scalar_lea.vmem [#allocation5], %s546_s6 }
  0x34   : > { %p1008_p7 = pnand %p1203_p2, %p1202_p1  ;;  %s222_s8 = sshll.u32 %s214_s26, 4  ;;  %s223_s8 = int_to_ptr.vmem [resolvable:$true] %s222_s8 }
  0x35   : > { %s211_s10 = scalar_lea.sflag [#allocation6], %s955_s5  ;;  %s676_s12 = scalar_lea.hbm %s1017_s11, 128 }
  0x36   : > { %s1204_s24 = scalar_select %p1008_p7, 1, 0 }
  0x37   : > { %p677_p9 = scmp.ne.s32.totalorder %s1017_s11, %s676_s12  ;;  %s681_s7 = scalar_lea.hbm %s1190_s1, 256 }
  0x38   : > { %p682_p3 = scmp.lt.u32.totalorder %s1017_s11, %s1190_s1  ;;  %p683_p6 = scmp.lt.u32.totalorder %s681_s7, %s676_s12 }
  0x39   : > { %p679_p11 = pnand %p677_p9, %p648_p5  ;;  %p685_p10 = scmp.lt.u32.totalorder %s676_s12, %s1017_s11 }
  0x3a   : > { %p684_p4 = por %p683_p6, %p682_p3 }
  0x3b   : > { %p680_p13 = pneg %p679_p11 }
  0x3c   : > { %p686_p12 = por %p685_p10, %p684_p4 }
  0x3e   : > { %p687_p1 = pnand %p686_p12, %p680_p13 }
  0x40   : > { %690 = shalt.err (!%p687_p1)
}
  0x41   : > { %s691_s5 = scalar_lea.vmem %s223_s8, 128  ;;  %s855_s6 = smov [#allocation5]  }
  0x42   : > { %p692_p2 = scmp.ne.s32.totalorder %s223_s8, %s691_s5  ;;  %s696_s26 = sshll.u32 %s855_s6, 4  ;;  %s697_s26 = int_to_ptr.vmem [resolvable:$false] %s696_s26 }
  0x43   : > { %s698_s14 = scalar_lea.vmem %s697_s26, 256  ;;  %p699_p8 = scmp.lt.s32.totalorder %s223_s8, %s697_s26 }
  0x44   : > { %p694_p9 = pnand %p692_p2, %p648_p5  ;;  %p700_p7 = scmp.lt.s32.totalorder %s698_s14, %s691_s5 }
  0x46   : > { %p695_p11 = pneg %p694_p9  ;;  %p701_p3 = por %p700_p7, %p699_p8 }
  0x48   : > { %p702_p6 = pnand %p701_p3, %p695_p11 }
  0x4a   : > { %705 = shalt.err (!%p702_p6)
}
  0x4b   : > { %580 = dma.hbm_to_vmem [thread:$0]  (!%p972_p0), %s1017_s11, 128, %s223_s8, %s211_s10  }
  0x4c   : > { %p1205_p13 = scmp.ne.s32.totalorder %s1204_s24, 0 }
  0x4d   : > { %s1044_s12 = sand.u32 (!%p1205_p13), 1, %s836_s16   ;;  %p1206_p8 = scmp.ne.s32.totalorder (!%p1205_p13), %s1198_s27, 0 }
  0x4e   : > { %231 = sbr.rel (%p1205_p13) target bundleno = 165 (0xa5), region = 28  ;;  %s1047_s9 = sshll.u32 (!%p1205_p13), %s1044_s12, 3 }
  0x4f   : > { %s234_s7 = scalar_lea.sflag (!%p1205_p13), [#allocation3], %s1044_s12  ;;  %s237_s22 = scalar_lea.vmem (!%p1205_p13), [#allocation2], %s1047_s9 }
  0x55   : > { %815 = dma.done.wait (%p1206_p8), %s234_s7, 128  }
  0x56   : > { %817 = vsyncadd (%p1206_p8), %s234_s7, 4294967168  ;;  %s243_s13 = scalar_lea.sflag [#allocation6], %s1044_s12  ;;  %s246_s24 = scalar_lea.vmem [#allocation5], %s1047_s9 }
  0x57   : > { %819 = dma.done.wait (%p1206_p8), %s243_s13, 128  }
  0x58   : > { %821 = vsyncadd (%p1206_p8), %s243_s13, 4294967168  ;;  %s333_s11 = sand.u32 1, %s915_s21   ;;  %s1063_s8 = sshll.u32 %s844_s18, 7  ;;  %v295_v0 = vld [vmem:[%s237_s22] sm:$0xff]  ;;  %v1065_v1 = vld [vmem:[%s246_s24] sm:$0xff] }
  0x59   : > { %s278_s10 = scalar_lea.vmem [#allocation8], %s1047_s9  ;;  %642 = vlog2.f32 %v295_v0  ;;  %v1068_v2 = vsub.f32 0.0, %v295_v0  ;;  %v320_v3 = vadd.f32 %v1065_v1, %v295_v0  ;;  %v315_v4 = vmul.f32 %v1065_v1, %v295_v0  ;;  %s271_s27 = scalar_lea.vmem [#allocation7], %s1047_s9 }
  0x5a   : > { %s365_s25 = sshll.u32 %s278_s10, 4  ;;  %s352_s5 = sshll.u32 %s271_s27, 4  ;;  %s1080_s25 = int_to_ptr.vmem [resolvable:$true] %s365_s25  ;;  %s1088_s5 = int_to_ptr.vmem [resolvable:$true] %s352_s5 }
  0x5b   : > { %s1077_s6 = scalar_lea.hbm %s1192_s3, %s1063_s8  ;;  %v301_v5 = vadd.f32 1.0, %v1068_v2  ;;  %s1086_s7 = scalar_lea.hbm %s1191_s2, %s1063_s8  ;;  %323 = vst [vmem:[%s278_s10] sm:$0xff] %v320_v3  ;;  %318 = vst [vmem:[%s271_s27] sm:$0xff] %v315_v4  ;;  %v304_v6 = vmul.f32 -0.5, %v1068_v2 }
  0x5c   : > { %s1091_s22 = scalar_lea.sflag [#allocation9], %s333_s11  ;;  %s706_s13 = scalar_lea.vmem %s1080_s25, 128 }
  0x5d   : > { %644 = vlog2.f32 %v301_v5  ;;  %p707_p0 = scmp.ne.s32.totalorder %s1080_s25, %s706_s13  ;;  %p1207_p5 = scmp.ne.s32.totalorder %s1199_s28, 0 }
  0x5e   : > { %s856_s24 = smov [#allocation8]  }
  0x5f   : > { %p708_p7 = pnand %p707_p0, %p1207_p5  ;;  %s710_s21 = sshll.u32 %s856_s24, 4  ;;  %s711_s21 = int_to_ptr.vmem [resolvable:$false] %s710_s21 }
  0x60   : > { %s712_s18 = scalar_lea.vmem %s711_s21, 256  ;;  %p713_p10 = scmp.lt.s32.totalorder %s1080_s25, %s711_s21 }
  0x61   : > { %p709_p4 = pneg %p708_p7  ;;  %p714_p12 = scmp.lt.s32.totalorder %s712_s18, %s706_s13 }
  0x63   : > { %p715_p1 = por %p714_p12, %p713_p10 }
  0x65   : > { %p716_p2 = pnand %p715_p1, %p709_p4 }
  0x67   : > { %719 = shalt.err (!%p716_p2)
}
  0x68   : > { %s720_s11 = scalar_lea.hbm %s1077_s6, 128  ;;  %s724_s26 = scalar_lea.hbm %s1192_s3, 256 }
  0x69   : > { %p721_p9 = scmp.ne.s32.totalorder %s1077_s6, %s720_s11  ;;  %p725_p6 = scmp.lt.u32.totalorder %s1077_s6, %s1192_s3 }
  0x6a   : > { %p726_p13 = scmp.lt.u32.totalorder %s724_s26, %s720_s11  ;;  %p728_p0 = scmp.lt.u32.totalorder %s720_s11, %s1077_s6 }
  0x6b   : > { %p722_p11 = pnand %p721_p9, %p1207_p5 }
  0x6c   : > { %p727_p8 = por %p726_p13, %p725_p6 }
  0x6d   : > { %p723_p3 = pneg %p722_p11 }
  0x6e   : > { %p729_p7 = por %p728_p0, %p727_p8 }
  0x70   : > { %p730_p4 = pnand %p729_p7, %p723_p3 }
  0x72   : > { %733 = shalt.err (!%p730_p4)
}
  0x73   : > { %569 = dma.vmem_to_hbm [thread:$0]  (%p1207_p5), %s1080_s25, 128, %s1077_s6, %s1091_s22  }
  0x74   : > { %s329_s13 = scalar_lea.sflag [#allocation4], %s1044_s12  ;;  %s734_s21 = scalar_lea.vmem %s1088_s5, 128 }
  0x75   : > { %p735_p10 = scmp.ne.s32.totalorder %s1088_s5, %s734_s21  ;;  %s857_s18 = smov [#allocation7]  }
  0x76   : > { %s738_s11 = sshll.u32 %s857_s18, 4  ;;  %s739_s11 = int_to_ptr.vmem [resolvable:$false] %s738_s11 }
  0x77   : > { %p736_p12 = pnand %p735_p10, %p1207_p5  ;;  %s740_s10 = scalar_lea.vmem %s739_s11, 256 }
  0x78   : > { %p741_p2 = scmp.lt.s32.totalorder %s1088_s5, %s739_s11  ;;  %p742_p9 = scmp.lt.s32.totalorder %s740_s10, %s734_s21 }
  0x79   : > { %p737_p1 = pneg %p736_p12 }
  0x7a   : > { %p743_p11 = por %p742_p9, %p741_p2 }
  0x7c   : > { %p744_p3 = pnand %p743_p11, %p737_p1 }
  0x7e   : > { %747 = shalt.err (!%p744_p3)
}
  0x7f   : > { %s748_s12 = scalar_lea.hbm %s1086_s7, 128  ;;  %s752_s27 = scalar_lea.hbm %s1191_s2, 256 }
  0x80   : > { %p749_p6 = scmp.ne.s32.totalorder %s1086_s7, %s748_s12  ;;  %p753_p0 = scmp.lt.u32.totalorder %s1086_s7, %s1191_s2 }
  0x81   : > { %p754_p7 = scmp.lt.u32.totalorder %s752_s27, %s748_s12  ;;  %p756_p10 = scmp.lt.u32.totalorder %s748_s12, %s1086_s7 }
  0x82   : > { %p750_p13 = pnand %p749_p6, %p1207_p5 }
  0x83   : > { %p755_p4 = por %p754_p7, %p753_p0 }
  0x84   : > { %p751_p8 = pneg %p750_p13 }
  0x85   : > { %p757_p12 = por %p756_p10, %p755_p4 }
  0x87   : > { %p758_p1 = pnand %p757_p12, %p751_p8 }
  0x89   : > { %761 = shalt.err (!%p758_p1)
}
  0x8a   : > { %568 = dma.vmem_to_hbm [thread:$0]  (%p1207_p5), %s1088_s5, 128, %s1086_s7, %s329_s13   ;;  %v305_v7 = vadd.f32 1.0, %v304_v6  ;;  %v643_v8 = vpop.eup %642  ;;  %v307_v9 = vand.u32 2147483647, %v1068_v2 }
  0x8b   : > { %v298_v10 = vmul.f32 0.6931472, %v643_v8  ;;  %v645_v12 = vpop.eup %644  ;;  %s285_s24 = scalar_lea.vmem [#allocation10], %s1047_s9  ;;  %s376_s21 = scalar_lea.hbm %s1193_s4, %s1063_s8 }
  0x8c   : > { %v306_v11 = vmul.f32 %v305_v7, %v1068_v2  ;;  %vm308_vm0 = vcmp.lt.f32.partialorder %v307_v9, 0.0004427343  ;;  %v303_v13 = vmul.f32 0.6931472, %v645_v12  ;;  %s378_s5 = sshll.u32 %s285_s24, 4  ;;  %s858_s11 = smov [#allocation10]   ;;  %s1141_s5 = int_to_ptr.vmem [resolvable:$true] %s378_s5 }
  0x8d   : > { %v299_v14 = vmax.f32 %v298_v10, -100.0  ;;  %s762_s18 = scalar_lea.vmem %s1141_s5, 128  ;;  %s766_s10 = sshll.u32 %s858_s11, 4  ;;  %s767_s10 = int_to_ptr.vmem [resolvable:$false] %s766_s10 }
  0x8e   : > { %v309_v15 = vsel %vm308_vm0, %v306_v11, %v303_v13  ;;  %p763_p2 = scmp.ne.s32.totalorder %s1141_s5, %s762_s18  ;;  %s768_s9 = scalar_lea.vmem %s767_s10, 256 }
  0x8f   : > { %v310_v16 = vmax.f32 %v309_v15, -100.0  ;;  %p769_p3 = scmp.lt.s32.totalorder %s1141_s5, %s767_s10  ;;  %p770_p6 = scmp.lt.s32.totalorder %s768_s9, %s762_s18 }
  0x90   : > { %p764_p9 = pnand %p763_p2, %p1207_p5 }
  0x91   : > { %v311_v17 = vsub.f32 %v299_v14, %v310_v16  ;;  %p771_p13 = por %p770_p6, %p769_p3 }
  0x92   : > { %p765_p11 = pneg %p764_p9 }
  0x93   : > { %v312_v18 = vmul.f32 %v311_v17, %v1065_v1 }
  0x94   : > { %p772_p8 = pnand %p771_p13, %p765_p11 }
  0x95   : > { %v313_v19 = vadd.f32 %v312_v18, %v310_v16 }
  0x97   : > { %327 = vst [vmem:[%s285_s24] sm:$0xff] %v313_v19 }
  0x98   : > { %775 = shalt.err (!%p772_p8)
}
  0x99   : > { %s776_s12 = scalar_lea.hbm %s376_s21, 128  ;;  %s780_s6 = scalar_lea.hbm %s1193_s4, 256 }
  0x9a   : > { %p777_p0 = scmp.ne.s32.totalorder %s376_s21, %s776_s12  ;;  %p781_p10 = scmp.lt.u32.totalorder %s376_s21, %s1193_s4 }
  0x9b   : > { %p782_p12 = scmp.lt.u32.totalorder %s780_s6, %s776_s12  ;;  %p784_p2 = scmp.lt.u32.totalorder %s776_s12, %s376_s21 }
  0x9c   : > { %p778_p7 = pnand %p777_p0, %p1207_p5 }
  0x9d   : > { %p783_p1 = por %p782_p12, %p781_p10 }
  0x9e   : > { %p779_p4 = pneg %p778_p7 }
  0x9f   : > { %p785_p9 = por %p784_p2, %p783_p1 }
  0xa1   : > { %p786_p11 = pnand %p785_p9, %p779_p4 }
  0xa3   : > { %789 = shalt.err (!%p786_p11)
}
  0xa4   : > { %570 = dma.vmem_to_hbm [thread:$0]  (%p1207_p5), %s1141_s5, 128, %s376_s21, %s1091_s22  }
  0xa5 PF: > { %s390_s14 = sand.u32 1, %s832_s15   ;;  %p1208_p3 = scmp.ne.s32.totalorder %s1200_s30, 0 }
  0xa6   : > { %p1209_p6 = scmp.ge.s32.totalorder %s852_s20, 2  ;;  %s391_s24 = scalar_lea.sflag [#allocation4], %s390_s14 }
  0xa8   : > { %p582_p13 = pnand %p1209_p6, %p1208_p3 }
  0xaa   : > { %823 = dma.done.wait (!%p582_p13), %s391_s24, 128  }
  0xab   : > { %825 = vsyncadd (!%p582_p13), %s391_s24, 4294967168  ;;  %s1210_s7 = sadd.s32 4294967294, %s852_s20  }
  0xac   : > { %s399_s13 = sand.u32 1, %s1210_s7  }
  0xad   : > { %s400_s18 = scalar_lea.sflag [#allocation9], %s399_s13 }
  0xae   : > { %827 = dma.done.wait (!%p582_p13), %s400_s18, 256  }
  0xaf   : > { %829 = vsyncadd (!%p582_p13), %s400_s18, 4294967040  ;;  %s27_s20 = sadd.s32 1, %s852_s20   ;;  %s1211_s15 = smov %s836_s16 }
  0xb0   : > { %p24_p5 = scmp.ge.s32.totalorder %s27_s20, 4   ;;  %s1212_s16 = smov %s840_s17 }
  0xb1   : > { %s1213_s17 = smov %s946_s29  ;;  %s1214_s18 = smov %s848_s19 }
  0xb2   : > { %s1215_s19 = smov %s1217_s23  ;;  %26 = sbr.rel (!%p24_p5) target bundleno = 10 (0xa), region = 122 }
  0xb9   :  { %414 = vsyncpa [#allocation3], 1 }
  0xba   :  { %416 = vsyncpa [#allocation3 + $0x1], 1 }
  0xbb   :  { %417 = vsyncpa [#allocation6], 1 }
  0xbc   :  { %419 = vsyncpa [#allocation6 + $0x1], 1 }
  0xbd   :  { %420 = vsyncpa [#allocation4], 1 }
  0xbe   :  { %422 = vsyncpa [#allocation4 + $0x1], 1 }
  0xbf   :  { %423 = vsyncpa [#allocation9], 1 }
  0xc0   :  { %425 = vsyncpa [#allocation9 + $0x1], 1 }

</bundles_post_ra>
